<compile_context>
chip_gen: v7x
topology: tpu7x:2x2x1
jax: 0.10.0
libtpu: 0.0.40
codegen_flags: <defaults>
</compile_context>

<pallas_src>
import jax
import jax.numpy as jnp
from jax.experimental import pallas as pl
from jax.experimental.pallas import tpu as pltpu

LN_EPS = 1e-5  # nn.LayerNorm default


# ----------------------------------------------------------------------------
# Kernels
# ----------------------------------------------------------------------------
def _fused_kernel(x_ref, w_ref, p_ref, o_ref):
    """Whole (D, D) weight resident in VMEM; one grid axis over row blocks."""
    x = x_ref[...]                              # (tm, D) input dtype
    p = p_ref[...]                              # (3, D) f32
    bias = p[0:1, :]
    gamma = p[1:2, :]
    beta = p[2:3, :]

    # sublayer(x) = Linear(D, D); dropout is identity in eval mode.
    # bf16 operands into the MXU, f32 accumulation.
    y = jnp.dot(x.astype(jnp.bfloat16), w_ref[...],
                preferred_element_type=jnp.float32) + bias

    # Two-pass LayerNorm over the last dim (matches PyTorch biased variance,
    # avoids E[y^2]-E[y]^2 cancellation).
    mean = jnp.mean(y, axis=-1, keepdims=True)
    yc = y - mean
    var = jnp.mean(yc * yc, axis=-1, keepdims=True)
    ln = yc * jax.lax.rsqrt(var + LN_EPS) * gamma + beta

    # residual + relu in f32, then cast to output dtype.
    o_ref[...] = (x.astype(jnp.float32) + jnp.maximum(ln, 0.0)).astype(o_ref.dtype)


def _ktiled_kernel(xk_ref, w_ref, p_ref, xfull_ref, o_ref, acc_ref):
    """Weight streamed in (tk, D) slabs over an inner 'arbitrary' K axis.

    Grid = (row_blocks, k_blocks).  acc_ref is a (tm, D) f32 VMEM accumulator.
    """
    k = pl.program_id(1)

    @pl.when(k == 0)
    def _():
        acc_ref[...] = jnp.zeros_like(acc_ref)

    acc_ref[...] += jnp.dot(xk_ref[...].astype(jnp.bfloat16), w_ref[...],
                            preferred_element_type=jnp.float32)

    @pl.when(k == pl.num_programs(1) - 1)
    def _():
        p = p_ref[...]
        bias = p[0:1, :]
        gamma = p[1:2, :]
        beta = p[2:3, :]

        y = acc_ref[...] + bias
        mean = jnp.mean(y, axis=-1, keepdims=True)
        yc = y - mean
        var = jnp.mean(yc * yc, axis=-1, keepdims=True)
        ln = yc * jax.lax.rsqrt(var + LN_EPS) * gamma + beta

        o_ref[...] = (xfull_ref[...].astype(jnp.float32)
                      + jnp.maximum(ln, 0.0)).astype(o_ref.dtype)


# ----------------------------------------------------------------------------
# Wrapper helpers
# ----------------------------------------------------------------------------
def _vmem_capacity_bytes():
    """Per-core VMEM capacity; conservative fallback if the query fails."""
    try:
        return int(pltpu.get_tpu_info().vmem_capacity_bytes)
    except Exception:
        return 64 * 1024 * 1024  # v7x per-TC size: safe lower bound everywhere


def _vmem_limit(needed_bytes, cap_bytes):
    """Explicit vmem_limit_bytes: headroom over the estimate, clamped to HW."""
    limit = max(int(needed_bytes * 1.2) + (2 << 20), 16 << 20)
    return min(limit, cap_bytes - (8 << 20))


def _round_up(a, b):
    return ((a + b - 1) // b) * b


def _resident_spec(shape, index_map, buffer_count):
    """Constant-index operand: single-buffer if supported, else default."""
    if buffer_count == 1:
        return pl.BlockSpec(shape, index_map, pipeline_mode=pl.Buffered(1))
    return pl.BlockSpec(shape, index_map)


# ----------------------------------------------------------------------------
# Public entry point
# ----------------------------------------------------------------------------
def residual_connection_xd(x, w, b, gamma, beta, *, tm=None, tk=None,
                           use_k_tiling=None, vmem_budget_bytes=None):
    """x: (B, S, D). Returns (B, S, D) = x + relu(LayerNorm(x @ w + b)).

    Eval-mode (dropout = identity).  choose_XD=1 (LayerNorm) variant.
    """
    B, S, D = x.shape
    assert D % 128 == 0, "hidden size must be a multiple of 128 (lane-dense layout)"
    N = B * S

    in_item = jnp.dtype(x.dtype).itemsize
    out_item = in_item

    cap = _vmem_capacity_bytes()
    budget = int(cap * 0.75) if vmem_budget_bytes is None else int(vmem_budget_bytes)

    w_bytes = D * D * 2        # bf16 resident weight
    p_bytes = 3 * D * 4        # packed [bias; gamma; beta] f32

    # Per-row VMEM of the fused path: x + out blocks (double-buffered) plus
    # ~3x f32 in-kernel temporaries (y, yc, ln).
    per_row_fused = D * (2 * in_item + 2 * out_item + 3 * 4)
    fused_fits = (w_bytes + p_bytes + 256 * per_row_fused) <= budget
    if use_k_tiling is None:
        use_k_tiling = not fused_fits

    w_bf = w.astype(jnp.bfloat16)
    params = jnp.stack([b, gamma, beta], 0).astype(jnp.float32)  # (3, D)

    x2 = x.reshape(N, D)

    # TODO(synk): training-mode dropout (Bernoulli mask via pltpu.prng_*) not
    # implemented; eval-mode dropout is identity.
    # TODO(synk): optional bf16 I/O for x/out would ~halve streamed HBM bytes in
    # the mem-bound small-D regime; kept f32 I/O to preserve caller semantics.

    if not use_k_tiling:
        # ---------------- fused path: resident weight ----------------
        if tm is None:
            avail = budget - (w_bytes + p_bytes)
            tm = max(256, min(1024, avail // max(per_row_fused, 1)))
            tm = max(256, (tm // 256) * 256)      # prefer multiples of 256
        tm = int(tm)
        tm = min(tm, _round_up(N, 8))             # don't exceed padded row count
        tm = max(8, (tm // 8) * 8)

        n_pad = _round_up(N, tm)                  # no masked-tail block
        xp = x2 if n_pad == N else jnp.pad(x2, ((0, n_pad - N), (0, 0)))
        grid = (n_pad // tm,)

        def call(resident_buffers):
            needed = (2 * tm * D * in_item                    # x blocks
                      + 2 * tm * D * out_item                 # out blocks
                      + resident_buffers * (w_bytes + p_bytes)
                      + 3 * tm * D * 4)                       # f32 temporaries
            return pl.pallas_call(
                _fused_kernel,
                out_shape=jax.ShapeDtypeStruct((n_pad, D), x.dtype),
                grid_spec=pltpu.PrefetchScalarGridSpec(
                    num_scalar_prefetch=0,
                    grid=grid,
                    in_specs=[
                        pl.BlockSpec((tm, D), lambda i: (i, 0)),                 # x rows
                        _resident_spec((D, D), lambda i: (0, 0), resident_buffers),  # weight
                        _resident_spec((3, D), lambda i: (0, 0), resident_buffers),  # params
                    ],
                    out_specs=pl.BlockSpec((tm, D), lambda i: (i, 0)),
                ),
                compiler_params=pltpu.CompilerParams(
                    dimension_semantics=("parallel",),
                    vmem_limit_bytes=_vmem_limit(needed, cap),
                ),
            )(xp, w_bf, params)

        try:
            out = call(1)      # single-buffered residents (half the weight VMEM)
        except Exception:
            out = call(2)      # fallback: default double-buffering
        return out[:N].reshape(B, S, D)

    # ---------------- K-tiled path: streamed weight ----------------
    if tm is None:
        tm = 256
    tm = int(tm)
    tm = min(tm, _round_up(N, 8))
    tm = max(8, (tm // 8) * 8)

    if tk is None:
        fixed = (2 * tm * D * in_item       # full-row residual x blocks
                 + 2 * tm * D * out_item    # out blocks
                 + p_bytes
                 + tm * D * 4               # f32 accumulator scratch
                 + 2 * tm * D * 4)          # finalize temporaries
        per_tk = 2 * tm * in_item + 2 * 2 * D   # xk blocks + bf16 weight slabs
        tk = (budget - fixed) // max(per_tk, 1)
    tk = max(128, (int(tk) // 128) * 128)
    tk = min(tk, D)
    while D % tk != 0:                      # tk must divide D (and D % 128 == 0)
        tk -= 128

    n_pad = _round_up(N, tm)
    xp = x2 if n_pad == N else jnp.pad(x2, ((0, n_pad - N), (0, 0)))
    grid = (n_pad // tm, D // tk)           # reduction axis innermost

    def call(resident_buffers):
        needed = (2 * tm * tk * in_item                 # xk blocks
                  + 2 * tm * D * in_item                # residual x blocks
                  + 2 * tm * D * out_item               # out blocks
                  + 2 * tk * D * 2                      # streamed weight slabs
                  + resident_buffers * p_bytes
                  + tm * D * 4                          # accumulator scratch
                  + 2 * tm * D * 4)                     # finalize temporaries
        return pl.pallas_call(
            _ktiled_kernel,
            out_shape=jax.ShapeDtypeStruct((n_pad, D), x.dtype),
            grid_spec=pltpu.PrefetchScalarGridSpec(
                num_scalar_prefetch=0,
                grid=grid,
                in_specs=[
                    pl.BlockSpec((tm, tk), lambda i, k: (i, k)),   # x K-slice (matmul LHS)
                    pl.BlockSpec((tk, D), lambda i, k: (k, 0)),    # streamed weight slab
                    _resident_spec((3, D), lambda i, k: (0, 0), resident_buffers),
                    pl.BlockSpec((tm, D), lambda i, k: (i, 0)),    # full x rows (residual)
                ],
                out_specs=pl.BlockSpec((tm, D), lambda i, k: (i, 0)),
                scratch_shapes=[pltpu.VMEM((tm, D), jnp.float32)],
            ),
            compiler_params=pltpu.CompilerParams(
                dimension_semantics=("parallel", "arbitrary"),
                vmem_limit_bytes=_vmem_limit(needed, cap),
            ),
        )(xp, w_bf, params, xp)

    try:
        out = call(1)
    except Exception:
        out = call(2)
    return out[:N].reshape(B, S, D)


# ----------------------------------------------------------------------------
# Pure-JAX reference (mirrors the kernel's bf16-matmul / f32-accumulate scheme)
# ----------------------------------------------------------------------------
def reference(x, w_bf16, b, gamma, beta):
    B, S, D = x.shape
    y = jnp.dot(x.reshape(-1, D).astype(jnp.bfloat16), w_bf16,
                preferred_element_type=jnp.float32).reshape(B, S, D) + b
    mean = jnp.mean(y, axis=-1, keepdims=True)
    var = jnp.mean((y - mean) ** 2, axis=-1, keepdims=True)
    ln = (y - mean) / jnp.sqrt(var + LN_EPS) * gamma + beta
    return x.astype(jnp.float32) + jnp.maximum(ln, 0.0)


if __name__ == "__main__":
    key = jax.random.PRNGKey(0)
    (kx, kw, kb, kg, kbe,
     kx2, kw2, kb2, kg2, kbe2) = jax.random.split(key, 10)

    # --- fused (resident-weight) path: batch=2, seq=8, hidden=128 ---
    B, S, D = 2, 8, 128
    x = jax.random.normal(kx, (B, S, D), dtype=jnp.float32)
    w = jax.random.normal(kw, (D, D), dtype=jnp.float32) * (1.0 / jnp.sqrt(D))
    b = jax.random.normal(kb, (D,), dtype=jnp.float32) * 0.1
    gamma = 1.0 + 0.1 * jax.random.normal(kg, (D,), dtype=jnp.float32)
    beta = 0.1 * jax.random.normal(kbe, (D,), dtype=jnp.float32)

    out = jax.block_until_ready(residual_connection_xd(x, w, b, gamma, beta))
    ref = reference(x, w.astype(jnp.bfloat16), b, gamma, beta)
    assert jnp.allclose(out, ref, atol=2e-3, rtol=2e-3), "fused path mismatch"

    # --- K-tiled (streamed-weight) path, forced, hidden=256 so K has 2 steps ---
    B2, S2, D2 = 2, 8, 256
    x2 = jax.random.normal(kx2, (B2, S2, D2), dtype=jnp.float32)
    w2 = jax.random.normal(kw2, (D2, D2), dtype=jnp.float32) * (1.0 / jnp.sqrt(D2))
    b2 = jax.random.normal(kb2, (D2,), dtype=jnp.float32) * 0.1
    gamma2 = 1.0 + 0.1 * jax.random.normal(kg2, (D2,), dtype=jnp.float32)
    beta2 = 0.1 * jax.random.normal(kbe2, (D2,), dtype=jnp.float32)

    out2 = jax.block_until_ready(
        residual_connection_xd(x2, w2, b2, gamma2, beta2,
                               use_k_tiling=True, tk=128, tm=128))
    ref2 = reference(x2, w2.astype(jnp.bfloat16), b2, gamma2, beta2)
    assert jnp.allclose(out2, ref2, atol=2e-3, rtol=2e-3), "k-tiled path mismatch"

    print("KERNEL_OK")
</pallas_src>

<mosaic_0001>
module attributes {stable_mosaic.version = 11 : i64} {
  func.func @_fused_kernel(%arg0: i32, %arg1: memref<16x128xf32, #tpu.memory_space<vmem>>, %arg2: memref<128x128xbf16, #tpu.memory_space<vmem>>, %arg3: memref<3x128xf32, #tpu.memory_space<vmem>>, %arg4: memref<16x128xf32, #tpu.memory_space<vmem>>) attributes {dimension_semantics = [#tpu.dimension_semantics<parallel>], iteration_bounds = array<i64: 1>, scalar_prefetch = 0 : i64, scratch_operands = 0 : i64, tpu.core_type = #tpu.core_type<tc>, window_params = [{transform_indices = @transform_0, window_bounds = array<i64: 16, 128>}, {pipeline_mode = #tpu.pipeline_mode<synchronous>, transform_indices = @transform_1, window_bounds = array<i64: 128, 128>}, {pipeline_mode = #tpu.pipeline_mode<synchronous>, transform_indices = @transform_2, window_bounds = array<i64: 3, 128>}, {transform_indices = @transform_3, window_bounds = array<i64: 16, 128>}]} {
    %c0 = arith.constant 0 : index
    %c0_0 = arith.constant 0 : index
    %0 = vector.load %arg1[%c0, %c0_0] : memref<16x128xf32, #tpu.memory_space<vmem>>, vector<16x128xf32>
    %c0_1 = arith.constant 0 : index
    %c0_2 = arith.constant 0 : index
    %1 = vector.load %arg3[%c0_1, %c0_2] : memref<3x128xf32, #tpu.memory_space<vmem>>, vector<3x128xf32>
    %2 = vector.extract_strided_slice %1 {offsets = [0, 0], sizes = [1, 128], strides = [1, 1]} : vector<3x128xf32> to vector<1x128xf32>
    %3 = vector.extract_strided_slice %1 {offsets = [1, 0], sizes = [1, 128], strides = [1, 1]} : vector<3x128xf32> to vector<1x128xf32>
    %4 = vector.extract_strided_slice %1 {offsets = [2, 0], sizes = [1, 128], strides = [1, 1]} : vector<3x128xf32> to vector<1x128xf32>
    %5 = arith.truncf %0 : vector<16x128xf32> to vector<16x128xbf16>
    %c0_3 = arith.constant 0 : index
    %c0_4 = arith.constant 0 : index
    %6 = vector.load %arg2[%c0_3, %c0_4] : memref<128x128xbf16, #tpu.memory_space<vmem>>, vector<128x128xbf16>
    %cst = arith.constant dense<0.000000e+00> : vector<16x128xf32>
    %7 = tpu.matmul %5, %6, %cst {dimension_numbers = #tpu.dot_dimension_numbers<[1], [0], [0], [1], [0, 0, 1, 1], [], []>} : vector<16x128xbf16>, vector<128x128xbf16>, vector<16x128xf32> -> vector<16x128xf32>
    %8 = vector.broadcast %2 : vector<1x128xf32> to vector<16x128xf32>
    %9 = arith.addf %7, %8 : vector<16x128xf32>
    %cst_5 = arith.constant dense<0.000000e+00> : vector<16xf32>
    %10 = vector.multi_reduction <add>, %9, %cst_5 [1] : vector<16x128xf32> to vector<16xf32>
    %11 = vector.shape_cast %10 : vector<16xf32> to vector<16x1xf32>
    %cst_6 = arith.constant 1.280000e+02 : f32
    %12 = vector.broadcast %cst_6 : f32 to vector<16x1xf32>
    %13 = arith.divf %11, %12 : vector<16x1xf32>
    %14 = vector.broadcast %13 : vector<16x1xf32> to vector<16x128xf32>
    %15 = arith.subf %9, %14 : vector<16x128xf32>
    %16 = arith.mulf %15, %15 : vector<16x128xf32>
    %cst_7 = arith.constant dense<0.000000e+00> : vector<16xf32>
    %17 = vector.multi_reduction <add>, %16, %cst_7 [1] : vector<16x128xf32> to vector<16xf32>
    %18 = vector.shape_cast %17 : vector<16xf32> to vector<16x1xf32>
    %cst_8 = arith.constant 1.280000e+02 : f32
    %19 = vector.broadcast %cst_8 : f32 to vector<16x1xf32>
    %20 = arith.divf %18, %19 : vector<16x1xf32>
    %cst_9 = arith.constant 9.99999974E-6 : f32
    %21 = vector.broadcast %cst_9 : f32 to vector<16x1xf32>
    %22 = arith.addf %20, %21 : vector<16x1xf32>
    %23 = math.rsqrt %22 : vector<16x1xf32>
    %24 = vector.broadcast %23 : vector<16x1xf32> to vector<16x128xf32>
    %25 = arith.mulf %15, %24 : vector<16x128xf32>
    %26 = vector.broadcast %3 : vector<1x128xf32> to vector<16x128xf32>
    %27 = arith.mulf %25, %26 : vector<16x128xf32>
    %28 = vector.broadcast %4 : vector<1x128xf32> to vector<16x128xf32>
    %29 = arith.addf %27, %28 : vector<16x128xf32>
    %cst_10 = arith.constant 0.000000e+00 : f32
    %30 = vector.broadcast %cst_10 : f32 to vector<16x128xf32>
    %31 = arith.maximumf %29, %30 : vector<16x128xf32>
    %32 = arith.addf %0, %31 : vector<16x128xf32>
    %c0_11 = arith.constant 0 : index
    %c0_12 = arith.constant 0 : index
    %33 = vector.load %arg4[%c0_11, %c0_12] : memref<16x128xf32, #tpu.memory_space<vmem>>, vector<16x128xf32>
    tpu.vector_store %arg4[%c0_11, %c0_12], %32 {strides = array<i32>} : memref<16x128xf32, #tpu.memory_space<vmem>>, vector<16x128xf32>,
    return
  }
  func.func @transform_0(%arg0: i32) -> (i32, i32) {
    %c0_i32 = arith.constant 0 : i32
    %c0_i32_0 = arith.constant 0 : i32
    return %arg0, %c0_i32 : i32, i32
  }
  func.func @transform_1(%arg0: i32) -> (i32, i32) {
    %c0_i32 = arith.constant 0 : i32
    %c0_i32_0 = arith.constant 0 : i32
    %c0_i32_1 = arith.constant 0 : i32
    return %c0_i32, %c0_i32_0 : i32, i32
  }
  func.func @transform_2(%arg0: i32) -> (i32, i32) {
    %c0_i32 = arith.constant 0 : i32
    %c0_i32_0 = arith.constant 0 : i32
    %c0_i32_1 = arith.constant 0 : i32
    return %c0_i32, %c0_i32_0 : i32, i32
  }
  func.func @transform_3(%arg0: i32) -> (i32, i32) {
    %c0_i32 = arith.constant 0 : i32
    %c0_i32_0 = arith.constant 0 : i32
    return %arg0, %c0_i32 : i32, i32
  }
}

module attributes {stable_mosaic.version = 11 : i64} {
  func.func @_fused_kernel(%arg0: i32, %arg1: memref<16x128xf32, #tpu.memory_space<vmem>>, %arg2: memref<128x128xbf16, #tpu.memory_space<vmem>>, %arg3: memref<3x128xf32, #tpu.memory_space<vmem>>, %arg4: memref<16x128xf32, #tpu.memory_space<vmem>>) attributes {dimension_semantics = [#tpu.dimension_semantics<parallel>], iteration_bounds = array<i64: 1>, scalar_prefetch = 0 : i64, scratch_operands = 0 : i64, tpu.core_type = #tpu.core_type<tc>, window_params = [{transform_indices = @transform_0, window_bounds = array<i64: 16, 128>}, {pipeline_mode = #tpu.pipeline_mode<synchronous>, transform_indices = @transform_1, window_bounds = array<i64: 128, 128>}, {pipeline_mode = #tpu.pipeline_mode<synchronous>, transform_indices = @transform_2, window_bounds = array<i64: 3, 128>}, {transform_indices = @transform_3, window_bounds = array<i64: 16, 128>}]} {
    %c0 = arith.constant 0 : index
    %c0_0 = arith.constant 0 : index
    %0 = vector.load %arg1[%c0, %c0_0] : memref<16x128xf32, #tpu.memory_space<vmem>>, vector<16x128xf32>
    %c0_1 = arith.constant 0 : index
    %c0_2 = arith.constant 0 : index
    %1 = vector.load %arg3[%c0_1, %c0_2] : memref<3x128xf32, #tpu.memory_space<vmem>>, vector<3x128xf32>
    %2 = vector.extract_strided_slice %1 {offsets = [0, 0], sizes = [1, 128], strides = [1, 1]} : vector<3x128xf32> to vector<1x128xf32>
    %3 = vector.extract_strided_slice %1 {offsets = [1, 0], sizes = [1, 128], strides = [1, 1]} : vector<3x128xf32> to vector<1x128xf32>
    %4 = vector.extract_strided_slice %1 {offsets = [2, 0], sizes = [1, 128], strides = [1, 1]} : vector<3x128xf32> to vector<1x128xf32>
    %5 = arith.truncf %0 : vector<16x128xf32> to vector<16x128xbf16>
    %c0_3 = arith.constant 0 : index
    %c0_4 = arith.constant 0 : index
    %6 = vector.load %arg2[%c0_3, %c0_4] : memref<128x128xbf16, #tpu.memory_space<vmem>>, vector<128x128xbf16>
    %cst = arith.constant dense<0.000000e+00> : vector<16x128xf32>
    %7 = tpu.matmul %5, %6, %cst {dimension_numbers = #tpu.dot_dimension_numbers<[1], [0], [0], [1], [0, 0, 1, 1], [], []>} : vector<16x128xbf16>, vector<128x128xbf16>, vector<16x128xf32> -> vector<16x128xf32>
    %8 = vector.broadcast %2 : vector<1x128xf32> to vector<16x128xf32>
    %9 = arith.addf %7, %8 : vector<16x128xf32>
    %cst_5 = arith.constant dense<0.000000e+00> : vector<16xf32>
    %10 = vector.multi_reduction <add>, %9, %cst_5 [1] : vector<16x128xf32> to vector<16xf32>
    %11 = vector.shape_cast %10 : vector<16xf32> to vector<16x1xf32>
    %cst_6 = arith.constant 1.280000e+02 : f32
    %12 = vector.broadcast %cst_6 : f32 to vector<16x1xf32>
    %13 = arith.divf %11, %12 : vector<16x1xf32>
    %14 = vector.broadcast %13 : vector<16x1xf32> to vector<16x128xf32>
    %15 = arith.subf %9, %14 : vector<16x128xf32>
    %16 = arith.mulf %15, %15 : vector<16x128xf32>
    %cst_7 = arith.constant dense<0.000000e+00> : vector<16xf32>
    %17 = vector.multi_reduction <add>, %16, %cst_7 [1] : vector<16x128xf32> to vector<16xf32>
    %18 = vector.shape_cast %17 : vector<16xf32> to vector<16x1xf32>
    %cst_8 = arith.constant 1.280000e+02 : f32
    %19 = vector.broadcast %cst_8 : f32 to vector<16x1xf32>
    %20 = arith.divf %18, %19 : vector<16x1xf32>
    %cst_9 = arith.constant 9.99999974E-6 : f32
    %21 = vector.broadcast %cst_9 : f32 to vector<16x1xf32>
    %22 = arith.addf %20, %21 : vector<16x1xf32>
    %23 = math.rsqrt %22 : vector<16x1xf32>
    %24 = vector.broadcast %23 : vector<16x1xf32> to vector<16x128xf32>
    %25 = arith.mulf %15, %24 : vector<16x128xf32>
    %26 = vector.broadcast %3 : vector<1x128xf32> to vector<16x128xf32>
    %27 = arith.mulf %25, %26 : vector<16x128xf32>
    %28 = vector.broadcast %4 : vector<1x128xf32> to vector<16x128xf32>
    %29 = arith.addf %27, %28 : vector<16x128xf32>
    %cst_10 = arith.constant 0.000000e+00 : f32
    %30 = vector.broadcast %cst_10 : f32 to vector<16x128xf32>
    %31 = arith.maximumf %29, %30 : vector<16x128xf32>
    %32 = arith.addf %0, %31 : vector<16x128xf32>
    %c0_11 = arith.constant 0 : index
    %c0_12 = arith.constant 0 : index
    %33 = vector.load %arg4[%c0_11, %c0_12] : memref<16x128xf32, #tpu.memory_space<vmem>>, vector<16x128xf32>
    tpu.vector_store %arg4[%c0_11, %c0_12], %32 {strides = array<i32>} : memref<16x128xf32, #tpu.memory_space<vmem>>, vector<16x128xf32>,
    return
  }
  func.func @transform_0(%arg0: i32) -> (i32, i32) {
    %c0_i32 = arith.constant 0 : i32
    %c0_i32_0 = arith.constant 0 : i32
    return %arg0, %c0_i32 : i32, i32
  }
  func.func @transform_1(%arg0: i32) -> (i32, i32) {
    %c0_i32 = arith.constant 0 : i32
    %c0_i32_0 = arith.constant 0 : i32
    %c0_i32_1 = arith.constant 0 : i32
    return %c0_i32, %c0_i32_0 : i32, i32
  }
  func.func @transform_2(%arg0: i32) -> (i32, i32) {
    %c0_i32 = arith.constant 0 : i32
    %c0_i32_0 = arith.constant 0 : i32
    %c0_i32_1 = arith.constant 0 : i32
    return %c0_i32, %c0_i32_0 : i32, i32
  }
  func.func @transform_3(%arg0: i32) -> (i32, i32) {
    %c0_i32 = arith.constant 0 : i32
    %c0_i32_0 = arith.constant 0 : i32
    return %arg0, %c0_i32 : i32, i32
  }
}

</mosaic_0001>

<bundles_post_ra>
// kernel: tpu_custom_call.1
= control target key start
LH: loop header
LB: loop body
LE: loop exit
PB: predicated region body
PF: predicated region fallthrough
CT: control target
= control target key end

     0   :  { %8 = vsyncpa [#allocation3], 0  ;;  %s420_s0 = inlined_call_operand.hbm [shape: f32[16,128], index: 0, kind: input, shape index: {}]   ;;  %s421_s1 = inlined_call_operand.hbm [shape: bf16[128,128], index: 1, kind: input, shape index: {}]   ;;  %s422_s2 = inlined_call_operand.vmem [shape: f32[3,128], index: 2, kind: input, shape index: {}]   ;;  %s423_s3 = inlined_call_operand.hbm [shape: f32[16,128], index: 3, kind: output, shape index: {}]  }
   0x1   :  { %9 = vsyncpa [#allocation6], 0 }
   0x2   :  { %10 = vsyncpa [#allocation4], 0  ;;  %s346_s12 = smov [#allocation2]   ;;  %s274_s16 = scalar_lea.hbm %s420_s0, 256 }
   0x3   :  { %s16_s13 = sshll.u32 %s346_s12, 4  ;;  %p275_p0 = scmp.ne.s32.totalorder %s420_s0, %s274_s16  ;;  %s17_s13 = int_to_ptr.vmem [resolvable:$true] %s16_s13 }
   0x4   :  { %p278_p1 = scmp.lt.u32.totalorder %s274_s16, %s420_s0 }
   0x6   :  { %p280_p2 = pnand %p278_p1, %p275_p0 }
   0x8   :  { %283 = shalt.err (!%p280_p2)
}
   0x9   :  { %s284_s21 = scalar_lea.vmem %s17_s13, 256  ;;  %p289_p4 = scmp.lt.s32.totalorder %s17_s13, %s17_s13 }
   0xa   :  { %p285_p3 = scmp.ne.s32.totalorder %s17_s13, %s284_s21  ;;  %p290_p5 = scmp.lt.s32.totalorder %s284_s21, %s284_s21 }
   0xc   :  { %p291_p6 = por %p290_p5, %p289_p4 }
   0xe   :  { %p292_p7 = pnand %p291_p6, %p285_p3 }
  0x10   :  { %295 = shalt.err (!%p292_p7)
}
  0x11   :  { %s347_s22 = smov 128   ;;  %s348_s23 = smov 8  }
  0x12   :  { %22 = dma.hbm_to_vmem [thread:$0]  %s420_s0, 256, %s17_s13, [#allocation3], %s347_s22, %s347_s22, %s348_s23  }
  0x13   :  { %s349_s26 = smov [#allocation5]   ;;  %s296_s30 = scalar_lea.hbm %s421_s1, 1024 }
  0x14   :  { %s28_s27 = sshll.u32 %s349_s26, 4  ;;  %p297_p8 = scmp.ne.s32.totalorder %s421_s1, %s296_s30  ;;  %s29_s27 = int_to_ptr.vmem [resolvable:$true] %s28_s27 }
  0x15   :  { %p300_p9 = scmp.lt.u32.totalorder %s296_s30, %s421_s1 }
  0x17   :  { %p302_p10 = pnand %p300_p9, %p297_p8 }
  0x19   :  { %305 = shalt.err (!%p302_p10)
}
  0x1a   :  { %s306_s8 = scalar_lea.vmem %s29_s27, 1024  ;;  %p311_p12 = scmp.lt.s32.totalorder %s29_s27, %s29_s27 }
  0x1b   :  { %p307_p11 = scmp.ne.s32.totalorder %s29_s27, %s306_s8  ;;  %p312_p13 = scmp.lt.s32.totalorder %s306_s8, %s306_s8 }
  0x1d   :  { %p313_p0 = por %p312_p13, %p311_p12 }
  0x1f   :  { %p314_p1 = pnand %p313_p0, %p307_p11 }
  0x21   :  { %317 = shalt.err (!%p314_p1)
}
  0x22   :  { %s350_s0 = smov 64   ;;  %s351_s9 = smov 4  }
  0x23   :  { %34 = dma.hbm_to_vmem [thread:$0]  %s421_s1, 1024, %s29_s27, [#allocation6], %s350_s0, %s350_s0, %s351_s9  }
  0x24   :  { %340 = dma.done.wait [#allocation3], 256  }
  0x25   :  { %341 = vsyncadd [#allocation3], 4294967040 }
  0x26   :  { %342 = dma.done.wait [#allocation6], 1024  }
  0x27   :  { %343 = vsyncadd [#allocation6], 4294966272  ;;  %v352_v0 = vmov 0.0   ;;  %vm353_vm0 = vmmov 0   ;;  %v262_v1 = vld [vmem:[#allocation5] sm:$0xff]   ;;  %v263_v2 = vld [vmem:[#allocation5 + $0x8] sm:$0xff]   ;;  %v64_v12 = vlaneseq }
  0x28   :  { %233 = vmatprep.subr.bf16.mxu0 %v352_v0  ;;  %249 = vmatprep.mubr.msk.bf16.mxu0 %vm353_vm0, %v352_v0  ;;  %v264_v3 = vld [vmem:[#allocation5 + $0x10] sm:$0xff]   ;;  %v265_v4 = vld [vmem:[#allocation5 + $0x18] sm:$0xff]   ;;  %v266_v5 = vld [vmem:[#allocation5 + $0x20] sm:$0xff]  }
  0x29   :  { %234 = vmatpush3.bf16.msra.mxu0 %v262_v1  ;;  %v267_v6 = vld [vmem:[#allocation5 + $0x28] sm:$0xff]   ;;  %v268_v7 = vld [vmem:[#allocation5 + $0x30] sm:$0xff]   ;;  %v269_v8 = vld [vmem:[#allocation5 + $0x38] sm:$0xff]   ;;  %v65_v13 = vshrl.u32 %v64_v12, 7 }
  0x2a   :  { %235 = vmatprep.subr.bf16.mxu0 %v352_v0  ;;  %v44_v9 = vld [vmem:[#allocation2] sm:$0xff]  ;;  %v45_v10 = vld [vmem:[#allocation2 + $0x8] sm:$0xff] }
  0x2b   :  { %v47_v11 = vpack.c.bf16 %v45_v10, %v44_v9  ;;  %v66_v14 = vsub.s32 0, %v65_v13  ;;  %v46_v15 = vld [vmem:[%s422_s2] sm:$0x7]  ;;  %v182_v37 = vsub.s32 1, %v65_v13  ;;  %v188_v38 = vsub.s32 2, %v65_v13  ;;  %s354_s2 = smov [#allocation7]  }
  0x2c   :  { %s203_s13 = sshll.u32 %s354_s2, 4  ;;  %s204_s13 = int_to_ptr.vmem [resolvable:$true] %s203_s13 }
  0x2d   :  { %236 = vmatpush3.bf16.msra.mxu0 %v263_v2  ;;  %v67_v16 = vrot.slane %v46_v15, %v66_v14  ;;  %v183_v39 = vrot.slane %v46_v15, %v182_v37  ;;  %v189_v41 = vrot.slane %v46_v15, %v188_v38  ;;  %s318_s14 = scalar_lea.vmem %s204_s13, 256  ;;  %p323_p3 = scmp.lt.s32.totalorder %s204_s13, %s204_s13 }
  0x2e   :  { %237 = vmatprep.subr.bf16.mxu0 %v352_v0  ;;  %p319_p2 = scmp.ne.s32.totalorder %s204_s13, %s318_s14  ;;  %p324_p4 = scmp.lt.s32.totalorder %s318_s14, %s318_s14 }
  0x30   :  { %p325_p5 = por %p324_p4, %p323_p3 }
  0x31   :  { %238 = vmatpush3.bf16.msra.mxu0 %v264_v3 }
  0x32   :  { %239 = vmatprep.subr.bf16.mxu0 %v352_v0  ;;  %p326_p6 = pnand %p325_p5, %p319_p2 }
  0x35   :  { %240 = vmatpush3.bf16.msra.mxu0 %v265_v4 }
  0x36   :  { %241 = vmatprep.subr.bf16.mxu0 %v352_v0 }
  0x39   :  { %242 = vmatpush3.bf16.msra.mxu0 %v266_v5 }
  0x3a   :  { %243 = vmatprep.subr.bf16.mxu0 %v352_v0 }
  0x3d   :  { %244 = vmatpush3.bf16.msra.mxu0 %v267_v6 }
  0x3e   :  { %245 = vmatprep.subr.bf16.mxu0 %v352_v0 }
  0x41   :  { %246 = vmatpush3.bf16.msra.mxu0 %v268_v7 }
  0x42   :  { %247 = vmatprep.subr.bf16.mxu0 %v352_v0 }
  0x45   :  { %248 = vmatpush3.bf16.msra.mxu0 %v269_v8 }
  0x48   :  { %250 = vmatmul.mubr.bf16.vlgmr.msra.gmra.mrb[0].mxu0 %v47_v11 }
 0x11b   :  { %v150_v17 = vpop.f32.mrb[0].mxu0 }
 0x11c   :  { %v151_v18 = vadd.f32 %v150_v17, %v67_v16  ;;  %v251_v19 = vpop.f32.mrb[1].mxu0 }
 0x11d   :  { %v153_v20 = vpop.f32.mrb[2].mxu0 }
 0x11e   :  { %157 = vadd.xlane.f32.xlu0 %v151_v18  ;;  %v252_v21 = vpop.f32.mrb[3].mxu0  ;;  %v154_v22 = vadd.f32 %v153_v20, %v67_v16 }
 0x122   :  { %159 = vadd.xlane.f32.xlu0 %v154_v22 }
 0x1ab   :  { %v158_v23 = vpop.xlane.xlu0 %157 }
 0x1ac   :  { %v162_v24 = vmul.f32 0.0078125, %v158_v23 }
 0x1ae   :  { %v164_v25 = vsub.f32 %v151_v18, %v162_v24 }
 0x1af   :  { %v160_v26 = vpop.xlane.xlu0 %159 }
 0x1b0   :  { %v163_v27 = vmul.f32 0.0078125, %v160_v26  ;;  %v166_v28 = vmul.f32 %v164_v25, %v164_v25 }
 0x1b2   :  { %v165_v29 = vsub.f32 %v154_v22, %v163_v27  ;;  %168 = vadd.xlane.f32.xlu1 %v166_v28 }
 0x1b4   :  { %v167_v30 = vmul.f32 %v165_v29, %v165_v29 }
 0x1b6   :  { %170 = vadd.xlane.f32.xlu1 %v167_v30 }
 0x23f   :  { %v169_v31 = vpop.xlane.xlu1 %168 }
 0x240   :  { %v172_v32 = vmul.f32 0.0078125, %v169_v31 }
 0x242   :  { %v174_v33 = vadd.f32 1e-05, %v172_v32 }
 0x243   :  { %v171_v34 = vpop.xlane.xlu1 %170 }
 0x244   :  { %270 = vrsqrt.f32 %v174_v33  ;;  %v173_v35 = vmul.f32 0.0078125, %v171_v34 }
 0x246   :  { %v175_v36 = vadd.f32 1e-05, %v173_v35 }
 0x248   :  { %272 = vrsqrt.f32 %v175_v36 }
 0x24e   :  { %v271_v40 = vpop.eup %270 }
 0x24f   :  { %v178_v42 = vmul.f32 %v271_v40, %v164_v25 }
 0x251   :  { %v184_v43 = vmul.f32 %v183_v39, %v178_v42 }
 0x252   :  { %v273_v44 = vpop.eup %272 }
 0x253   :  { %v179_v45 = vmul.f32 %v273_v44, %v165_v29  ;;  %v190_v46 = vadd.f32 %v189_v41, %v184_v43 }
 0x255   :  { %v185_v47 = vmul.f32 %v183_v39, %v179_v45  ;;  %v192_v48 = vmax.f32 %v190_v46, 0.0 }
 0x257   :  { %v191_v49 = vadd.f32 %v189_v41, %v185_v47  ;;  %v194_v50 = vadd.f32 %v192_v48, %v44_v9 }
 0x259   :  { %v193_v51 = vmax.f32 %v191_v49, 0.0  ;;  %196 = vst [vmem:[#allocation7] sm:$0xff] %v194_v50 }
 0x25b   :  { %v195_v52 = vadd.f32 %v193_v51, %v45_v10 }
 0x25d   :  { %197 = vst [vmem:[#allocation7 + $0x8] sm:$0xff] %v195_v52 }
 0x25e   :  { %329 = shalt.err (!%p326_p6)
}
 0x25f   :  { %s330_s17 = scalar_lea.hbm %s423_s3, 256 }
 0x260   :  { %p331_p7 = scmp.ne.s32.totalorder %s423_s3, %s330_s17  ;;  %p334_p8 = scmp.lt.u32.totalorder %s330_s17, %s423_s3 }
 0x262   :  { %p336_p9 = pnand %p334_p8, %p331_p7 }
 0x264   :  { %339 = shalt.err (!%p336_p9)
}
 0x265   :  { %209 = dma.vmem_to_hbm [thread:$0]  %s204_s13, 256, %s423_s3, [#allocation4], %s347_s22, %s347_s22, %s348_s23  }
 0x266   :  { %344 = dma.done.wait [#allocation4], 256  }
 0x267   :  { %345 = vsyncadd [#allocation4], 4294967040 }
 0x268   :  { %213 = vsyncpa [#allocation3], 1 }
 0x269   :  { %214 = vsyncpa [#allocation6], 1 }
 0x26a   :  { %215 = vsyncpa [#allocation4], 1 }

// kernel: tpu_custom_call.1
= control target key start
LH: loop header
LB: loop body
LE: loop exit
PB: predicated region body
PF: predicated region fallthrough
CT: control target
= control target key end

     0   :  { %8 = vsyncpa [#allocation3], 0  ;;  %s420_s0 = inlined_call_operand.hbm [shape: f32[16,128], index: 0, kind: input, shape index: {}]   ;;  %s421_s1 = inlined_call_operand.hbm [shape: bf16[128,128], index: 1, kind: input, shape index: {}]   ;;  %s422_s2 = inlined_call_operand.vmem [shape: f32[3,128], index: 2, kind: input, shape index: {}]   ;;  %s423_s3 = inlined_call_operand.hbm [shape: f32[16,128], index: 3, kind: output, shape index: {}]  }
   0x1   :  { %9 = vsyncpa [#allocation6], 0 }
   0x2   :  { %10 = vsyncpa [#allocation4], 0  ;;  %s346_s12 = smov [#allocation2]   ;;  %s274_s16 = scalar_lea.hbm %s420_s0, 256 }
   0x3   :  { %s16_s13 = sshll.u32 %s346_s12, 4  ;;  %p275_p0 = scmp.ne.s32.totalorder %s420_s0, %s274_s16  ;;  %s17_s13 = int_to_ptr.vmem [resolvable:$true] %s16_s13 }
   0x4   :  { %p278_p1 = scmp.lt.u32.totalorder %s274_s16, %s420_s0 }
   0x6   :  { %p280_p2 = pnand %p278_p1, %p275_p0 }
   0x8   :  { %283 = shalt.err (!%p280_p2)
}
   0x9   :  { %s284_s21 = scalar_lea.vmem %s17_s13, 256  ;;  %p289_p4 = scmp.lt.s32.totalorder %s17_s13, %s17_s13 }
   0xa   :  { %p285_p3 = scmp.ne.s32.totalorder %s17_s13, %s284_s21  ;;  %p290_p5 = scmp.lt.s32.totalorder %s284_s21, %s284_s21 }
   0xc   :  { %p291_p6 = por %p290_p5, %p289_p4 }
   0xe   :  { %p292_p7 = pnand %p291_p6, %p285_p3 }
  0x10   :  { %295 = shalt.err (!%p292_p7)
}
  0x11   :  { %s347_s22 = smov 128   ;;  %s348_s23 = smov 8  }
  0x12   :  { %22 = dma.hbm_to_vmem [thread:$0]  %s420_s0, 256, %s17_s13, [#allocation3], %s347_s22, %s347_s22, %s348_s23  }
  0x13   :  { %s349_s26 = smov [#allocation5]   ;;  %s296_s30 = scalar_lea.hbm %s421_s1, 1024 }
  0x14   :  { %s28_s27 = sshll.u32 %s349_s26, 4  ;;  %p297_p8 = scmp.ne.s32.totalorder %s421_s1, %s296_s30  ;;  %s29_s27 = int_to_ptr.vmem [resolvable:$true] %s28_s27 }
  0x15   :  { %p300_p9 = scmp.lt.u32.totalorder %s296_s30, %s421_s1 }
  0x17   :  { %p302_p10 = pnand %p300_p9, %p297_p8 }
  0x19   :  { %305 = shalt.err (!%p302_p10)
}
  0x1a   :  { %s306_s8 = scalar_lea.vmem %s29_s27, 1024  ;;  %p311_p12 = scmp.lt.s32.totalorder %s29_s27, %s29_s27 }
  0x1b   :  { %p307_p11 = scmp.ne.s32.totalorder %s29_s27, %s306_s8  ;;  %p312_p13 = scmp.lt.s32.totalorder %s306_s8, %s306_s8 }
  0x1d   :  { %p313_p0 = por %p312_p13, %p311_p12 }
  0x1f   :  { %p314_p1 = pnand %p313_p0, %p307_p11 }
  0x21   :  { %317 = shalt.err (!%p314_p1)
}
  0x22   :  { %s350_s0 = smov 64   ;;  %s351_s9 = smov 4  }
  0x23   :  { %34 = dma.hbm_to_vmem [thread:$0]  %s421_s1, 1024, %s29_s27, [#allocation6], %s350_s0, %s350_s0, %s351_s9  }
  0x24   :  { %340 = dma.done.wait [#allocation3], 256  }
  0x25   :  { %341 = vsyncadd [#allocation3], 4294967040 }
  0x26   :  { %342 = dma.done.wait [#allocation6], 1024  }
  0x27   :  { %343 = vsyncadd [#allocation6], 4294966272  ;;  %v352_v0 = vmov 0.0   ;;  %vm353_vm0 = vmmov 0   ;;  %v262_v1 = vld [vmem:[#allocation5] sm:$0xff]   ;;  %v263_v2 = vld [vmem:[#allocation5 + $0x8] sm:$0xff]   ;;  %v64_v12 = vlaneseq }
  0x28   :  { %233 = vmatprep.subr.bf16.mxu0 %v352_v0  ;;  %249 = vmatprep.mubr.msk.bf16.mxu0 %vm353_vm0, %v352_v0  ;;  %v264_v3 = vld [vmem:[#allocation5 + $0x10] sm:$0xff]   ;;  %v265_v4 = vld [vmem:[#allocation5 + $0x18] sm:$0xff]   ;;  %v266_v5 = vld [vmem:[#allocation5 + $0x20] sm:$0xff]  }
  0x29   :  { %234 = vmatpush3.bf16.msra.mxu0 %v262_v1  ;;  %v267_v6 = vld [vmem:[#allocation5 + $0x28] sm:$0xff]   ;;  %v268_v7 = vld [vmem:[#allocation5 + $0x30] sm:$0xff]   ;;  %v269_v8 = vld [vmem:[#allocation5 + $0x38] sm:$0xff]   ;;  %v65_v13 = vshrl.u32 %v64_v12, 7 }
  0x2a   :  { %235 = vmatprep.subr.bf16.mxu0 %v352_v0  ;;  %v44_v9 = vld [vmem:[#allocation2] sm:$0xff]  ;;  %v45_v10 = vld [vmem:[#allocation2 + $0x8] sm:$0xff] }
  0x2b   :  { %v47_v11 = vpack.c.bf16 %v45_v10, %v44_v9  ;;  %v66_v14 = vsub.s32 0, %v65_v13  ;;  %v46_v15 = vld [vmem:[%s422_s2] sm:$0x7]  ;;  %v182_v37 = vsub.s32 1, %v65_v13  ;;  %v188_v38 = vsub.s32 2, %v65_v13  ;;  %s354_s2 = smov [#allocation7]  }
  0x2c   :  { %s203_s13 = sshll.u32 %s354_s2, 4  ;;  %s204_s13 = int_to_ptr.vmem [resolvable:$true] %s203_s13 }
  0x2d   :  { %236 = vmatpush3.bf16.msra.mxu0 %v263_v2  ;;  %v67_v16 = vrot.slane %v46_v15, %v66_v14  ;;  %v183_v39 = vrot.slane %v46_v15, %v182_v37  ;;  %v189_v41 = vrot.slane %v46_v15, %v188_v38  ;;  %s318_s14 = scalar_lea.vmem %s204_s13, 256  ;;  %p323_p3 = scmp.lt.s32.totalorder %s204_s13, %s204_s13 }
  0x2e   :  { %237 = vmatprep.subr.bf16.mxu0 %v352_v0  ;;  %p319_p2 = scmp.ne.s32.totalorder %s204_s13, %s318_s14  ;;  %p324_p4 = scmp.lt.s32.totalorder %s318_s14, %s318_s14 }
  0x30   :  { %p325_p5 = por %p324_p4, %p323_p3 }
  0x31   :  { %238 = vmatpush3.bf16.msra.mxu0 %v264_v3 }
  0x32   :  { %239 = vmatprep.subr.bf16.mxu0 %v352_v0  ;;  %p326_p6 = pnand %p325_p5, %p319_p2 }
  0x35   :  { %240 = vmatpush3.bf16.msra.mxu0 %v265_v4 }
  0x36   :  { %241 = vmatprep.subr.bf16.mxu0 %v352_v0 }
  0x39   :  { %242 = vmatpush3.bf16.msra.mxu0 %v266_v5 }
  0x3a   :  { %243 = vmatprep.subr.bf16.mxu0 %v352_v0 }
  0x3d   :  { %244 = vmatpush3.bf16.msra.mxu0 %v267_v6 }
  0x3e   :  { %245 = vmatprep.subr.bf16.mxu0 %v352_v0 }
  0x41   :  { %246 = vmatpush3.bf16.msra.mxu0 %v268_v7 }
  0x42   :  { %247 = vmatprep.subr.bf16.mxu0 %v352_v0 }
  0x45   :  { %248 = vmatpush3.bf16.msra.mxu0 %v269_v8 }
  0x48   :  { %250 = vmatmul.mubr.bf16.vlgmr.msra.gmra.mrb[0].mxu0 %v47_v11 }
 0x11b   :  { %v150_v17 = vpop.f32.mrb[0].mxu0 }
 0x11c   :  { %v151_v18 = vadd.f32 %v150_v17, %v67_v16  ;;  %v251_v19 = vpop.f32.mrb[1].mxu0 }
 0x11d   :  { %v153_v20 = vpop.f32.mrb[2].mxu0 }
 0x11e   :  { %157 = vadd.xlane.f32.xlu0 %v151_v18  ;;  %v252_v21 = vpop.f32.mrb[3].mxu0  ;;  %v154_v22 = vadd.f32 %v153_v20, %v67_v16 }
 0x122   :  { %159 = vadd.xlane.f32.xlu0 %v154_v22 }
 0x1ab   :  { %v158_v23 = vpop.xlane.xlu0 %157 }
 0x1ac   :  { %v162_v24 = vmul.f32 0.0078125, %v158_v23 }
 0x1ae   :  { %v164_v25 = vsub.f32 %v151_v18, %v162_v24 }
 0x1af   :  { %v160_v26 = vpop.xlane.xlu0 %159 }
 0x1b0   :  { %v163_v27 = vmul.f32 0.0078125, %v160_v26  ;;  %v166_v28 = vmul.f32 %v164_v25, %v164_v25 }
 0x1b2   :  { %v165_v29 = vsub.f32 %v154_v22, %v163_v27  ;;  %168 = vadd.xlane.f32.xlu1 %v166_v28 }
 0x1b4   :  { %v167_v30 = vmul.f32 %v165_v29, %v165_v29 }
 0x1b6   :  { %170 = vadd.xlane.f32.xlu1 %v167_v30 }
 0x23f   :  { %v169_v31 = vpop.xlane.xlu1 %168 }
 0x240   :  { %v172_v32 = vmul.f32 0.0078125, %v169_v31 }
 0x242   :  { %v174_v33 = vadd.f32 1e-05, %v172_v32 }
 0x243   :  { %v171_v34 = vpop.xlane.xlu1 %170 }
 0x244   :  { %270 = vrsqrt.f32 %v174_v33  ;;  %v173_v35 = vmul.f32 0.0078125, %v171_v34 }
 0x246   :  { %v175_v36 = vadd.f32 1e-05, %v173_v35 }
 0x248   :  { %272 = vrsqrt.f32 %v175_v36 }
 0x24e   :  { %v271_v40 = vpop.eup %270 }
 0x24f   :  { %v178_v42 = vmul.f32 %v271_v40, %v164_v25 }
 0x251   :  { %v184_v43 = vmul.f32 %v183_v39, %v178_v42 }
 0x252   :  { %v273_v44 = vpop.eup %272 }
 0x253   :  { %v179_v45 = vmul.f32 %v273_v44, %v165_v29  ;;  %v190_v46 = vadd.f32 %v189_v41, %v184_v43 }
 0x255   :  { %v185_v47 = vmul.f32 %v183_v39, %v179_v45  ;;  %v192_v48 = vmax.f32 %v190_v46, 0.0 }
 0x257   :  { %v191_v49 = vadd.f32 %v189_v41, %v185_v47  ;;  %v194_v50 = vadd.f32 %v192_v48, %v44_v9 }
 0x259   :  { %v193_v51 = vmax.f32 %v191_v49, 0.0  ;;  %196 = vst [vmem:[#allocation7] sm:$0xff] %v194_v50 }
 0x25b   :  { %v195_v52 = vadd.f32 %v193_v51, %v45_v10 }
 0x25d   :  { %197 = vst [vmem:[#allocation7 + $0x8] sm:$0xff] %v195_v52 }
 0x25e   :  { %329 = shalt.err (!%p326_p6)
}
 0x25f   :  { %s330_s17 = scalar_lea.hbm %s423_s3, 256 }
 0x260   :  { %p331_p7 = scmp.ne.s32.totalorder %s423_s3, %s330_s17  ;;  %p334_p8 = scmp.lt.u32.totalorder %s330_s17, %s423_s3 }
 0x262   :  { %p336_p9 = pnand %p334_p8, %p331_p7 }
 0x264   :  { %339 = shalt.err (!%p336_p9)
}
 0x265   :  { %209 = dma.vmem_to_hbm [thread:$0]  %s204_s13, 256, %s423_s3, [#allocation4], %s347_s22, %s347_s22, %s348_s23  }
 0x266   :  { %344 = dma.done.wait [#allocation4], 256  }
 0x267   :  { %345 = vsyncadd [#allocation4], 4294967040 }
 0x268   :  { %213 = vsyncpa [#allocation3], 1 }
 0x269   :  { %214 = vsyncpa [#allocation6], 1 }
 0x26a   :  { %215 = vsyncpa [#allocation4], 1 }

</bundles_post_ra>
